<compile_context>
chip_gen: v6e
topology: v6e:2x2x1
jax: 0.10.0
libtpu: 0.0.40
codegen_flags: <defaults>
</compile_context>

<pallas_src>
import functools

import jax
import jax.numpy as jnp
from jax.experimental import pallas as pl
from jax.experimental.pallas import tpu as pltpu


def _basic_block_kernel(x_ref, w1_ref, b1_ref, w2_ref, b2_ref, mask_ref,
                        out_ref, p_ref, *, width):
    """One grid step processes BN images (grid = (N // BN,)).

    x_ref   : (BN, C, H*W)   f32   NCHW-flattened image block
    w1_ref  : (Cout, 9*C)    bf16  conv1 weights, bn1 scale folded in
    b1_ref  : (Cout, 1)      f32   bn1 folded bias
    w2_ref  : (Cout, 9*Cout) bf16  conv2 weights, bn2 scale folded in
    b2_ref  : (Cout, 1)      f32   bn2 folded bias
    mask_ref: (9, BN*H*W)    f32   per-tap 0/1 border-validity masks
    out_ref : (BN, Cout, H*W) f32
    p_ref   : VMEM (9*C, BN*H*W) bf16 im2col scratch (shared by both convs)
    """
    bn, c, hw = x_ref.shape
    m = bn * hw

    # Residual source / conv1 input as one (C, BN*H*W) lane-dense slab.
    xs = [x_ref[b] for b in range(bn)]
    xflat = xs[0] if bn == 1 else jnp.concatenate(xs, axis=-1)      # (C, M) f32

    def conv3x3(src, w_ref):
        # im2col: row block t of the scratch holds `src` shifted by tap t
        # (lane roll), with zeros at image borders (precomputed mask).
        for t in range(9):
            ky, kx = t // 3, t % 3
            d = (ky - 1) * width + (kx - 1)   # flat pixel offset of this tap
            shifted = src if d == 0 else jnp.roll(src, -d, axis=-1)
            if ky == 1 and kx == 1:           # centre tap: mask is all-ones
                masked = shifted
            else:
                masked = shifted * mask_ref[t:t + 1, :]
            p_ref[t * c:(t + 1) * c, :] = masked.astype(jnp.bfloat16)
        # Single fused matmul per conv: (Cout, 9C) @ (9C, M), f32 accumulate.
        return jnp.dot(w_ref[...], p_ref[...],
                       preferred_element_type=jnp.float32)          # (Cout, M)

    # conv1 -> bn1 (folded) -> relu
    y = jnp.maximum(conv3x3(xflat, w1_ref) + b1_ref[...], 0.0)
    # conv2 -> bn2 (folded) -> + identity -> relu
    z = conv3x3(y, w2_ref) + b2_ref[...] + xflat
    z = jnp.maximum(z, 0.0)

    # Lane-dense stores (HW-aligned lane slices per image).
    for b in range(bn):
        out_ref[b] = z[:, b * hw:(b + 1) * hw]


def _pick_block_n(n, hw, c):
    """Largest power-of-two divisor of n with a modest per-step block size."""
    bn = 1
    while n % (bn * 2) == 0 and (bn * 2) * hw * c * 4 <= (2 << 20):
        bn *= 2
    return bn


@jax.jit
def basic_block_forward(x_nchw, w1, g1, be1, m1, v1, w2, g2, be2, m2, v2,
                        eps=1e-5):
    """x_nchw: (N, Cin, H, W); w1/w2: (Cout, Cin, 3, 3) in PyTorch layout."""
    N, Cin, H, W = x_nchw.shape
    Cout = w1.shape[0]
    assert Cin == Cout, "downsample=None path requires in_chns == out_chns"
    HW = H * W
    BN = _pick_block_n(N, HW, Cin)

    # NCHW -> (N, C, H*W): a free reshape, no transpose pass over HBM.
    x_flat = x_nchw.reshape(N, Cin, HW).astype(jnp.float32)

    # Fold BN into the conv weights / biases (tiny tensors, plain JAX).
    s1 = (g1 / jnp.sqrt(v1 + eps)).astype(jnp.float32)
    s2 = (g2 / jnp.sqrt(v2 + eps)).astype(jnp.float32)
    b1 = (be1 - m1 * s1).reshape(Cout, 1).astype(jnp.float32)
    b2 = (be2 - m2 * s2).reshape(Cout, 1).astype(jnp.float32)
    # (Cout, Cin, 3, 3) -> (Cout, 3, 3, Cin) -> (Cout, 9*Cin); column order
    # matches the im2col row order (tap-major, channel-minor). bf16 for MXU.
    w1_mat = (jnp.transpose(w1, (0, 2, 3, 1)).reshape(Cout, 9 * Cin)
              * s1[:, None]).astype(jnp.bfloat16)
    w2_mat = (jnp.transpose(w2, (0, 2, 3, 1)).reshape(Cout, 9 * Cout)
              * s2[:, None]).astype(jnp.bfloat16)

    # Per-tap 0/1 validity masks over the flattened (BN*H*W) pixel axis:
    # emulate zero padding and kill roll wrap-around / cross-image leakage.
    g = jnp.arange(BN * HW, dtype=jnp.int32)
    pix = g % HW
    yy = pix // W
    xx = pix % W
    rows = []
    for ky in range(3):
        for kx in range(3):
            vy = (yy + (ky - 1) >= 0) & (yy + (ky - 1) < H)
            vx = (xx + (kx - 1) >= 0) & (xx + (kx - 1) < W)
            rows.append((vy & vx).astype(jnp.float32))
    tap_mask = jnp.stack(rows, axis=0)                    # (9, BN*HW)

    out_flat = pl.pallas_call(
        functools.partial(_basic_block_kernel, width=W),
        out_shape=jax.ShapeDtypeStruct((N, Cout, HW), jnp.float32),
        grid=(N // BN,),
        in_specs=[
            pl.BlockSpec((BN, Cin, HW), lambda n: (n, 0, 0)),
            pl.BlockSpec((Cout, 9 * Cin), lambda n: (0, 0)),
            pl.BlockSpec((Cout, 1), lambda n: (0, 0)),
            pl.BlockSpec((Cout, 9 * Cout), lambda n: (0, 0)),
            pl.BlockSpec((Cout, 1), lambda n: (0, 0)),
            pl.BlockSpec((9, BN * HW), lambda n: (0, 0)),
        ],
        out_specs=pl.BlockSpec((BN, Cout, HW), lambda n: (n, 0, 0)),
        scratch_shapes=[pltpu.VMEM((9 * Cin, BN * HW), jnp.bfloat16)],
        compiler_params=pltpu.CompilerParams(
            dimension_semantics=("parallel",)),
    )(x_flat, w1_mat, b1, w2_mat, b2, tap_mask)

    return out_flat.reshape(N, Cout, H, W)                # already NCHW


def _reference_forward(x, w1, g1, be1, m1, v1, w2, g2, be2, m2, v2, eps=1e-5):
    """Plain-JAX reference (NCHW), mirrors the PyTorch module in eval mode."""
    def conv(x_, w_):
        return jax.lax.conv_general_dilated(
            x_, w_, window_strides=(1, 1), padding=((1, 1), (1, 1)),
            dimension_numbers=("NCHW", "OIHW", "NCHW"))

    def bn(x_, g, b, m, v):
        g, b, m, v = (t.reshape(1, -1, 1, 1) for t in (g, b, m, v))
        return (x_ - m) / jnp.sqrt(v + eps) * g + b

    out = jax.nn.relu(bn(conv(x, w1), g1, be1, m1, v1))
    out = bn(conv(out, w2), g2, be2, m2, v2)
    out = out + x        # downsample is None -> identity = x
    return jax.nn.relu(out)


if __name__ == "__main__":
    # Small shapes consistent with the module: downsample=None -> stride 1,
    # so out_chns == in_chns is required for the residual add.
    N, C, H, W = 2, 4, 16, 16
    Cin = Cout = C

    key = jax.random.PRNGKey(0)
    keys = jax.random.split(key, 10)
    x = jax.random.normal(keys[0], (N, Cin, H, W), jnp.float32)

    # Deterministic synthetic parameters (PyTorch layouts).
    w1 = jax.random.normal(keys[1], (Cout, Cin, 3, 3), jnp.float32) * 0.2
    w2 = jax.random.normal(keys[2], (Cout, Cout, 3, 3), jnp.float32) * 0.2
    g1 = 1.0 + 0.1 * jax.random.normal(keys[3], (Cout,), jnp.float32)
    be1 = 0.1 * jax.random.normal(keys[4], (Cout,), jnp.float32)
    m1 = 0.1 * jax.random.normal(keys[5], (Cout,), jnp.float32)
    v1 = 1.0 + 0.1 * jax.random.uniform(keys[6], (Cout,), jnp.float32)
    g2 = 1.0 + 0.1 * jax.random.normal(keys[7], (Cout,), jnp.float32)
    be2 = 0.1 * jax.random.normal(keys[8], (Cout,), jnp.float32)
    m2 = 0.1 * jax.random.normal(keys[9], (Cout,), jnp.float32)
    v2 = 1.0 + 0.1 * jax.random.uniform(keys[0], (Cout,), jnp.float32)

    # TODO(synk): the optional `downsample` submodule is an arbitrary
    # user-supplied nn.Module (stride-2 path); only downsample=None is
    # implemented here.

    out = basic_block_forward(x, w1, g1, be1, m1, v1, w2, g2, be2, m2, v2)
    out = jax.block_until_ready(out)

    ref = _reference_forward(x, w1, g1, be1, m1, v1, w2, g2, be2, m2, v2)
    ref = jax.block_until_ready(ref)

    assert out.shape == (N, Cout, H, W), out.shape
    # bf16 MXU operands in the kernel vs f32 reference conv -> compare with a
    # relative-to-max tolerance.
    max_diff = float(jnp.max(jnp.abs(out - ref)))
    ref_scale = max(float(jnp.max(jnp.abs(ref))), 1.0)
    assert max_diff <= 3e-2 * ref_scale, (max_diff, ref_scale)

    print("KERNEL_OK")
</pallas_src>

<mosaic_0001>
module attributes {stable_mosaic.version = 11 : i64} {
  func.func @_basic_block_kernel(%arg0: i32, %arg1: memref<2x4x256xf32, #tpu.memory_space<vmem>>, %arg2: memref<4x36xbf16, #tpu.memory_space<vmem>>, %arg3: memref<4x1xf32, #tpu.memory_space<vmem>>, %arg4: memref<4x36xbf16, #tpu.memory_space<vmem>>, %arg5: memref<4x1xf32, #tpu.memory_space<vmem>>, %arg6: memref<9x512xf32, #tpu.memory_space<vmem>>, %arg7: memref<2x4x256xf32, #tpu.memory_space<vmem>>, %arg8: memref<36x512xbf16, #tpu.memory_space<vmem>>) attributes {dimension_semantics = [#tpu.dimension_semantics<parallel>], iteration_bounds = array<i64: 1>, scalar_prefetch = 0 : i64, scratch_operands = 1 : i64, tpu.core_type = #tpu.core_type<tc>, window_params = [{transform_indices = @transform_0, window_bounds = array<i64: 2, 4, 256>}, {pipeline_mode = #tpu.pipeline_mode<synchronous>, transform_indices = @transform_1, window_bounds = array<i64: 4, 36>}, {pipeline_mode = #tpu.pipeline_mode<synchronous>, transform_indices = @transform_2, window_bounds = array<i64: 4, 1>}, {pipeline_mode = #tpu.pipeline_mode<synchronous>, transform_indices = @transform_3, window_bounds = array<i64: 4, 36>}, {pipeline_mode = #tpu.pipeline_mode<synchronous>, transform_indices = @transform_4, window_bounds = array<i64: 4, 1>}, {pipeline_mode = #tpu.pipeline_mode<synchronous>, transform_indices = @transform_5, window_bounds = array<i64: 9, 512>}, {transform_indices = @transform_6, window_bounds = array<i64: 2, 4, 256>}]} {
    %c0 = arith.constant 0 : index
    %c0_0 = arith.constant 0 : index
    %c0_1 = arith.constant 0 : index
    %0 = vector.load %arg1[%c0, %c0_0, %c0_1] : memref<2x4x256xf32, #tpu.memory_space<vmem>>, vector<1x4x256xf32>
    %1 = vector.shape_cast %0 : vector<1x4x256xf32> to vector<4x256xf32>
    %c1 = arith.constant 1 : index
    %c0_2 = arith.constant 0 : index
    %c0_3 = arith.constant 0 : index
    %2 = vector.load %arg1[%c1, %c0_2, %c0_3] : memref<2x4x256xf32, #tpu.memory_space<vmem>>, vector<1x4x256xf32>
    %3 = vector.shape_cast %2 : vector<1x4x256xf32> to vector<4x256xf32>
    %4 = tpu.concatenate %1, %3 in 1 : vector<4x256xf32>, vector<4x256xf32> -> vector<4x512xf32>
    %5 = vector.extract_strided_slice %4 {offsets = [0, 495], sizes = [4, 17], strides = [1, 1]} : vector<4x512xf32> to vector<4x17xf32>
    %6 = vector.extract_strided_slice %4 {offsets = [0, 0], sizes = [4, 495], strides = [1, 1]} : vector<4x512xf32> to vector<4x495xf32>
    %7 = tpu.concatenate %5, %6 in 1 : vector<4x17xf32>, vector<4x495xf32> -> vector<4x512xf32>
    %c0_4 = arith.constant 0 : index
    %c0_5 = arith.constant 0 : index
    %8 = vector.load %arg6[%c0_4, %c0_5] : memref<9x512xf32, #tpu.memory_space<vmem>>, vector<1x512xf32>
    %9 = vector.broadcast %8 : vector<1x512xf32> to vector<4x512xf32>
    %10 = arith.mulf %7, %9 : vector<4x512xf32>
    %11 = arith.truncf %10 : vector<4x512xf32> to vector<4x512xbf16>
    %c0_6 = arith.constant 0 : index
    %c0_7 = arith.constant 0 : index
    %12 = vector.load %arg8[%c0_6, %c0_7] : memref<36x512xbf16, #tpu.memory_space<vmem>>, vector<4x512xbf16>
    tpu.vector_store %arg8[%c0_6, %c0_7], %11 {strides = array<i32>} : memref<36x512xbf16, #tpu.memory_space<vmem>>, vector<4x512xbf16>,
    %13 = vector.extract_strided_slice %4 {offsets = [0, 496], sizes = [4, 16], strides = [1, 1]} : vector<4x512xf32> to vector<4x16xf32>
    %14 = vector.extract_strided_slice %4 {offsets = [0, 0], sizes = [4, 496], strides = [1, 1]} : vector<4x512xf32> to vector<4x496xf32>
    %15 = tpu.concatenate %13, %14 in 1 : vector<4x16xf32>, vector<4x496xf32> -> vector<4x512xf32>
    %c1_8 = arith.constant 1 : index
    %c0_9 = arith.constant 0 : index
    %16 = vector.load %arg6[%c1_8, %c0_9] : memref<9x512xf32, #tpu.memory_space<vmem>>, vector<1x512xf32>
    %17 = vector.broadcast %16 : vector<1x512xf32> to vector<4x512xf32>
    %18 = arith.mulf %15, %17 : vector<4x512xf32>
    %19 = arith.truncf %18 : vector<4x512xf32> to vector<4x512xbf16>
    %c4 = arith.constant 4 : index
    %c0_10 = arith.constant 0 : index
    %20 = vector.load %arg8[%c4, %c0_10] : memref<36x512xbf16, #tpu.memory_space<vmem>>, vector<4x512xbf16>
    tpu.vector_store %arg8[%c4, %c0_10], %19 {strides = array<i32>} : memref<36x512xbf16, #tpu.memory_space<vmem>>, vector<4x512xbf16>,
    %21 = vector.extract_strided_slice %4 {offsets = [0, 497], sizes = [4, 15], strides = [1, 1]} : vector<4x512xf32> to vector<4x15xf32>
    %22 = vector.extract_strided_slice %4 {offsets = [0, 0], sizes = [4, 497], strides = [1, 1]} : vector<4x512xf32> to vector<4x497xf32>
    %23 = tpu.concatenate %21, %22 in 1 : vector<4x15xf32>, vector<4x497xf32> -> vector<4x512xf32>
    %c2 = arith.constant 2 : index
    %c0_11 = arith.constant 0 : index
    %24 = vector.load %arg6[%c2, %c0_11] : memref<9x512xf32, #tpu.memory_space<vmem>>, vector<1x512xf32>
    %25 = vector.broadcast %24 : vector<1x512xf32> to vector<4x512xf32>
    %26 = arith.mulf %23, %25 : vector<4x512xf32>
    %27 = arith.truncf %26 : vector<4x512xf32> to vector<4x512xbf16>
    %c8 = arith.constant 8 : index
    %c0_12 = arith.constant 0 : index
    %28 = vector.load %arg8[%c8, %c0_12] : memref<36x512xbf16, #tpu.memory_space<vmem>>, vector<4x512xbf16>
    tpu.vector_store %arg8[%c8, %c0_12], %27 {strides = array<i32>} : memref<36x512xbf16, #tpu.memory_space<vmem>>, vector<4x512xbf16>,
    %29 = vector.extract_strided_slice %4 {offsets = [0, 511], sizes = [4, 1], strides = [1, 1]} : vector<4x512xf32> to vector<4x1xf32>
    %30 = vector.extract_strided_slice %4 {offsets = [0, 0], sizes = [4, 511], strides = [1, 1]} : vector<4x512xf32> to vector<4x511xf32>
    %31 = tpu.concatenate %29, %30 in 1 : vector<4x1xf32>, vector<4x511xf32> -> vector<4x512xf32>
    %c3 = arith.constant 3 : index
    %c0_13 = arith.constant 0 : index
    %32 = vector.load %arg6[%c3, %c0_13] : memref<9x512xf32, #tpu.memory_space<vmem>>, vector<1x512xf32>
    %33 = vector.broadcast %32 : vector<1x512xf32> to vector<4x512xf32>
    %34 = arith.mulf %31, %33 : vector<4x512xf32>
    %35 = arith.truncf %34 : vector<4x512xf32> to vector<4x512xbf16>
    %c12 = arith.constant 12 : index
    %c0_14 = arith.constant 0 : index
    %36 = vector.load %arg8[%c12, %c0_14] : memref<36x512xbf16, #tpu.memory_space<vmem>>, vector<4x512xbf16>
    tpu.vector_store %arg8[%c12, %c0_14], %35 {strides = array<i32>} : memref<36x512xbf16, #tpu.memory_space<vmem>>, vector<4x512xbf16>,
    %37 = arith.truncf %4 : vector<4x512xf32> to vector<4x512xbf16>
    %c16 = arith.constant 16 : index
    %c0_15 = arith.constant 0 : index
    %38 = vector.load %arg8[%c16, %c0_15] : memref<36x512xbf16, #tpu.memory_space<vmem>>, vector<4x512xbf16>
    tpu.vector_store %arg8[%c16, %c0_15], %37 {strides = array<i32>} : memref<36x512xbf16, #tpu.memory_space<vmem>>, vector<4x512xbf16>,
    %39 = vector.extract_strided_slice %4 {offsets = [0, 1], sizes = [4, 511], strides = [1, 1]} : vector<4x512xf32> to vector<4x511xf32>
    %40 = vector.extract_strided_slice %4 {offsets = [0, 0], sizes = [4, 1], strides = [1, 1]} : vector<4x512xf32> to vector<4x1xf32>
    %41 = tpu.concatenate %39, %40 in 1 : vector<4x511xf32>, vector<4x1xf32> -> vector<4x512xf32>
    %c5 = arith.constant 5 : index
    %c0_16 = arith.constant 0 : index
    %42 = vector.load %arg6[%c5, %c0_16] : memref<9x512xf32, #tpu.memory_space<vmem>>, vector<1x512xf32>
    %43 = vector.broadcast %42 : vector<1x512xf32> to vector<4x512xf32>
    %44 = arith.mulf %41, %43 : vector<4x512xf32>
    %45 = arith.truncf %44 : vector<4x512xf32> to vector<4x512xbf16>
    %c20 = arith.constant 20 : index
    %c0_17 = arith.constant 0 : index
    %46 = vector.load %arg8[%c20, %c0_17] : memref<36x512xbf16, #tpu.memory_space<vmem>>, vector<4x512xbf16>
    tpu.vector_store %arg8[%c20, %c0_17], %45 {strides = array<i32>} : memref<36x512xbf16, #tpu.memory_space<vmem>>, vector<4x512xbf16>,
    %47 = vector.extract_strided_slice %4 {offsets = [0, 15], sizes = [4, 497], strides = [1, 1]} : vector<4x512xf32> to vector<4x497xf32>
    %48 = vector.extract_strided_slice %4 {offsets = [0, 0], sizes = [4, 15], strides = [1, 1]} : vector<4x512xf32> to vector<4x15xf32>
    %49 = tpu.concatenate %47, %48 in 1 : vector<4x497xf32>, vector<4x15xf32> -> vector<4x512xf32>
    %c6 = arith.constant 6 : index
    %c0_18 = arith.constant 0 : index
    %50 = vector.load %arg6[%c6, %c0_18] : memref<9x512xf32, #tpu.memory_space<vmem>>, vector<1x512xf32>
    %51 = vector.broadcast %50 : vector<1x512xf32> to vector<4x512xf32>
    %52 = arith.mulf %49, %51 : vector<4x512xf32>
    %53 = arith.truncf %52 : vector<4x512xf32> to vector<4x512xbf16>
    %c24 = arith.constant 24 : index
    %c0_19 = arith.constant 0 : index
    %54 = vector.load %arg8[%c24, %c0_19] : memref<36x512xbf16, #tpu.memory_space<vmem>>, vector<4x512xbf16>
    tpu.vector_store %arg8[%c24, %c0_19], %53 {strides = array<i32>} : memref<36x512xbf16, #tpu.memory_space<vmem>>, vector<4x512xbf16>,
    %55 = vector.extract_strided_slice %4 {offsets = [0, 16], sizes = [4, 496], strides = [1, 1]} : vector<4x512xf32> to vector<4x496xf32>
    %56 = vector.extract_strided_slice %4 {offsets = [0, 0], sizes = [4, 16], strides = [1, 1]} : vector<4x512xf32> to vector<4x16xf32>
    %57 = tpu.concatenate %55, %56 in 1 : vector<4x496xf32>, vector<4x16xf32> -> vector<4x512xf32>
    %c7 = arith.constant 7 : index
    %c0_20 = arith.constant 0 : index
    %58 = vector.load %arg6[%c7, %c0_20] : memref<9x512xf32, #tpu.memory_space<vmem>>, vector<1x512xf32>
    %59 = vector.broadcast %58 : vector<1x512xf32> to vector<4x512xf32>
    %60 = arith.mulf %57, %59 : vector<4x512xf32>
    %61 = arith.truncf %60 : vector<4x512xf32> to vector<4x512xbf16>
    %c28 = arith.constant 28 : index
    %c0_21 = arith.constant 0 : index
    %62 = vector.load %arg8[%c28, %c0_21] : memref<36x512xbf16, #tpu.memory_space<vmem>>, vector<4x512xbf16>
    tpu.vector_store %arg8[%c28, %c0_21], %61 {strides = array<i32>} : memref<36x512xbf16, #tpu.memory_space<vmem>>, vector<4x512xbf16>,
    %63 = vector.extract_strided_slice %4 {offsets = [0, 17], sizes = [4, 495], strides = [1, 1]} : vector<4x512xf32> to vector<4x495xf32>
    %64 = vector.extract_strided_slice %4 {offsets = [0, 0], sizes = [4, 17], strides = [1, 1]} : vector<4x512xf32> to vector<4x17xf32>
    %65 = tpu.concatenate %63, %64 in 1 : vector<4x495xf32>, vector<4x17xf32> -> vector<4x512xf32>
    %c8_22 = arith.constant 8 : index
    %c0_23 = arith.constant 0 : index
    %66 = vector.load %arg6[%c8_22, %c0_23] : memref<9x512xf32, #tpu.memory_space<vmem>>, vector<1x512xf32>
    %67 = vector.broadcast %66 : vector<1x512xf32> to vector<4x512xf32>
    %68 = arith.mulf %65, %67 : vector<4x512xf32>
    %69 = arith.truncf %68 : vector<4x512xf32> to vector<4x512xbf16>
    %c32 = arith.constant 32 : index
    %c0_24 = arith.constant 0 : index
    %70 = vector.load %arg8[%c32, %c0_24] : memref<36x512xbf16, #tpu.memory_space<vmem>>, vector<4x512xbf16>
    tpu.vector_store %arg8[%c32, %c0_24], %69 {strides = array<i32>} : memref<36x512xbf16, #tpu.memory_space<vmem>>, vector<4x512xbf16>,
    %c0_25 = arith.constant 0 : index
    %c0_26 = arith.constant 0 : index
    %71 = vector.load %arg2[%c0_25, %c0_26] : memref<4x36xbf16, #tpu.memory_space<vmem>>, vector<4x36xbf16>
    %c0_27 = arith.constant 0 : index
    %c0_28 = arith.constant 0 : index
    %72 = vector.load %arg8[%c0_27, %c0_28] : memref<36x512xbf16, #tpu.memory_space<vmem>>, vector<36x512xbf16>
    %cst = arith.constant dense<0.000000e+00> : vector<4x512xf32>
    %73 = tpu.matmul %71, %72, %cst {dimension_numbers = #tpu.dot_dimension_numbers<[1], [0], [0], [1], [0, 0, 1, 1], [], []>} : vector<4x36xbf16>, vector<36x512xbf16>, vector<4x512xf32> -> vector<4x512xf32>
    %c0_29 = arith.constant 0 : index
    %c0_30 = arith.constant 0 : index
    %74 = vector.load %arg3[%c0_29, %c0_30] : memref<4x1xf32, #tpu.memory_space<vmem>>, vector<4x1xf32>
    %75 = vector.broadcast %74 : vector<4x1xf32> to vector<4x512xf32>
    %76 = arith.addf %73, %75 : vector<4x512xf32>
    %cst_31 = arith.constant 0.000000e+00 : f32
    %77 = vector.broadcast %cst_31 : f32 to vector<4x512xf32>
    %78 = arith.maximumf %76, %77 : vector<4x512xf32>
    %79 = vector.extract_strided_slice %78 {offsets = [0, 495], sizes = [4, 17], strides = [1, 1]} : vector<4x512xf32> to vector<4x17xf32>
    %80 = vector.extract_strided_slice %78 {offsets = [0, 0], sizes = [4, 495], strides = [1, 1]} : vector<4x512xf32> to vector<4x495xf32>
    %81 = tpu.concatenate %79, %80 in 1 : vector<4x17xf32>, vector<4x495xf32> -> vector<4x512xf32>
    %c0_32 = arith.constant 0 : index
    %c0_33 = arith.constant 0 : index
    %82 = vector.load %arg6[%c0_32, %c0_33] : memref<9x512xf32, #tpu.memory_space<vmem>>, vector<1x512xf32>
    %83 = vector.broadcast %82 : vector<1x512xf32> to vector<4x512xf32>
    %84 = arith.mulf %81, %83 : vector<4x512xf32>
    %85 = arith.truncf %84 : vector<4x512xf32> to vector<4x512xbf16>
    %c0_34 = arith.constant 0 : index
    %c0_35 = arith.constant 0 : index
    %86 = vector.load %arg8[%c0_34, %c0_35] : memref<36x512xbf16, #tpu.memory_space<vmem>>, vector<4x512xbf16>
    tpu.vector_store %arg8[%c0_34, %c0_35], %85 {strides = array<i32>} : memref<36x512xbf16, #tpu.memory_space<vmem>>, vector<4x512xbf16>,
    %87 = vector.extract_strided_slice %78 {offsets = [0, 496], sizes = [4, 16], strides = [1, 1]} : vector<4x512xf32> to vector<4x16xf32>
    %88 = vector.extract_strided_slice %78 {offsets = [0, 0], sizes = [4, 496], strides = [1, 1]} : vector<4x512xf32> to vector<4x496xf32>
    %89 = tpu.concatenate %87, %88 in 1 : vector<4x16xf32>, vector<4x496xf32> -> vector<4x512xf32>
    %c1_36 = arith.constant 1 : index
    %c0_37 = arith.constant 0 : index
    %90 = vector.load %arg6[%c1_36, %c0_37] : memref<9x512xf32, #tpu.memory_space<vmem>>, vector<1x512xf32>
    %91 = vector.broadcast %90 : vector<1x512xf32> to vector<4x512xf32>
    %92 = arith.mulf %89, %91 : vector<4x512xf32>
    %93 = arith.truncf %92 : vector<4x512xf32> to vector<4x512xbf16>
    %c4_38 = arith.constant 4 : index
    %c0_39 = arith.constant 0 : index
    %94 = vector.load %arg8[%c4_38, %c0_39] : memref<36x512xbf16, #tpu.memory_space<vmem>>, vector<4x512xbf16>
    tpu.vector_store %arg8[%c4_38, %c0_39], %93 {strides = array<i32>} : memref<36x512xbf16, #tpu.memory_space<vmem>>, vector<4x512xbf16>,
    %95 = vector.extract_strided_slice %78 {offsets = [0, 497], sizes = [4, 15], strides = [1, 1]} : vector<4x512xf32> to vector<4x15xf32>
    %96 = vector.extract_strided_slice %78 {offsets = [0, 0], sizes = [4, 497], strides = [1, 1]} : vector<4x512xf32> to vector<4x497xf32>
    %97 = tpu.concatenate %95, %96 in 1 : vector<4x15xf32>, vector<4x497xf32> -> vector<4x512xf32>
    %c2_40 = arith.constant 2 : index
    %c0_41 = arith.constant 0 : index
    %98 = vector.load %arg6[%c2_40, %c0_41] : memref<9x512xf32, #tpu.memory_space<vmem>>, vector<1x512xf32>
    %99 = vector.broadcast %98 : vector<1x512xf32> to vector<4x512xf32>
    %100 = arith.mulf %97, %99 : vector<4x512xf32>
    %101 = arith.truncf %100 : vector<4x512xf32> to vector<4x512xbf16>
    %c8_42 = arith.constant 8 : index
    %c0_43 = arith.constant 0 : index
    %102 = vector.load %arg8[%c8_42, %c0_43] : memref<36x512xbf16, #tpu.memory_space<vmem>>, vector<4x512xbf16>
    tpu.vector_store %arg8[%c8_42, %c0_43], %101 {strides = array<i32>} : memref<36x512xbf16, #tpu.memory_space<vmem>>, vector<4x512xbf16>,
    %103 = vector.extract_strided_slice %78 {offsets = [0, 511], sizes = [4, 1], strides = [1, 1]} : vector<4x512xf32> to vector<4x1xf32>
    %104 = vector.extract_strided_slice %78 {offsets = [0, 0], sizes = [4, 511], strides = [1, 1]} : vector<4x512xf32> to vector<4x511xf32>
    %105 = tpu.concatenate %103, %104 in 1 : vector<4x1xf32>, vector<4x511xf32> -> vector<4x512xf32>
    %c3_44 = arith.constant 3 : index
    %c0_45 = arith.constant 0 : index
    %106 = vector.load %arg6[%c3_44, %c0_45] : memref<9x512xf32, #tpu.memory_space<vmem>>, vector<1x512xf32>
    %107 = vector.broadcast %106 : vector<1x512xf32> to vector<4x512xf32>
    %108 = arith.mulf %105, %107 : vector<4x512xf32>
    %109 = arith.truncf %108 : vector<4x512xf32> to vector<4x512xbf16>
    %c12_46 = arith.constant 12 : index
    %c0_47 = arith.constant 0 : index
    %110 = vector.load %arg8[%c12_46, %c0_47] : memref<36x512xbf16, #tpu.memory_space<vmem>>, vector<4x512xbf16>
    tpu.vector_store %arg8[%c12_46, %c0_47], %109 {strides = array<i32>} : memref<36x512xbf16, #tpu.memory_space<vmem>>, vector<4x512xbf16>,
    %111 = arith.truncf %78 : vector<4x512xf32> to vector<4x512xbf16>
    %c16_48 = arith.constant 16 : index
    %c0_49 = arith.constant 0 : index
    %112 = vector.load %arg8[%c16_48, %c0_49] : memref<36x512xbf16, #tpu.memory_space<vmem>>, vector<4x512xbf16>
    tpu.vector_store %arg8[%c16_48, %c0_49], %111 {strides = array<i32>} : memref<36x512xbf16, #tpu.memory_space<vmem>>, vector<4x512xbf16>,
    %113 = vector.extract_strided_slice %78 {offsets = [0, 1], sizes = [4, 511], strides = [1, 1]} : vector<4x512xf32> to vector<4x511xf32>
    %114 = vector.extract_strided_slice %78 {offsets = [0, 0], sizes = [4, 1], strides = [1, 1]} : vector<4x512xf32> to vector<4x1xf32>
    %115 = tpu.concatenate %113, %114 in 1 : vector<4x511xf32>, vector<4x1xf32> -> vector<4x512xf32>
    %c5_50 = arith.constant 5 : index
    %c0_51 = arith.constant 0 : index
    %116 = vector.load %arg6[%c5_50, %c0_51] : memref<9x512xf32, #tpu.memory_space<vmem>>, vector<1x512xf32>
    %117 = vector.broadcast %116 : vector<1x512xf32> to vector<4x512xf32>
    %118 = arith.mulf %115, %117 : vector<4x512xf32>
    %119 = arith.truncf %118 : vector<4x512xf32> to vector<4x512xbf16>
    %c20_52 = arith.constant 20 : index
    %c0_53 = arith.constant 0 : index
    %120 = vector.load %arg8[%c20_52, %c0_53] : memref<36x512xbf16, #tpu.memory_space<vmem>>, vector<4x512xbf16>
    tpu.vector_store %arg8[%c20_52, %c0_53], %119 {strides = array<i32>} : memref<36x512xbf16, #tpu.memory_space<vmem>>, vector<4x512xbf16>,
    %121 = vector.extract_strided_slice %78 {offsets = [0, 15], sizes = [4, 497], strides = [1, 1]} : vector<4x512xf32> to vector<4x497xf32>
    %122 = vector.extract_strided_slice %78 {offsets = [0, 0], sizes = [4, 15], strides = [1, 1]} : vector<4x512xf32> to vector<4x15xf32>
    %123 = tpu.concatenate %121, %122 in 1 : vector<4x497xf32>, vector<4x15xf32> -> vector<4x512xf32>
    %c6_54 = arith.constant 6 : index
    %c0_55 = arith.constant 0 : index
    %124 = vector.load %arg6[%c6_54, %c0_55] : memref<9x512xf32, #tpu.memory_space<vmem>>, vector<1x512xf32>
    %125 = vector.broadcast %124 : vector<1x512xf32> to vector<4x512xf32>
    %126 = arith.mulf %123, %125 : vector<4x512xf32>
    %127 = arith.truncf %126 : vector<4x512xf32> to vector<4x512xbf16>
    %c24_56 = arith.constant 24 : index
    %c0_57 = arith.constant 0 : index
    %128 = vector.load %arg8[%c24_56, %c0_57] : memref<36x512xbf16, #tpu.memory_space<vmem>>, vector<4x512xbf16>
    tpu.vector_store %arg8[%c24_56, %c0_57], %127 {strides = array<i32>} : memref<36x512xbf16, #tpu.memory_space<vmem>>, vector<4x512xbf16>,
    %129 = vector.extract_strided_slice %78 {offsets = [0, 16], sizes = [4, 496], strides = [1, 1]} : vector<4x512xf32> to vector<4x496xf32>
    %130 = vector.extract_strided_slice %78 {offsets = [0, 0], sizes = [4, 16], strides = [1, 1]} : vector<4x512xf32> to vector<4x16xf32>
    %131 = tpu.concatenate %129, %130 in 1 : vector<4x496xf32>, vector<4x16xf32> -> vector<4x512xf32>
    %c7_58 = arith.constant 7 : index
    %c0_59 = arith.constant 0 : index
    %132 = vector.load %arg6[%c7_58, %c0_59] : memref<9x512xf32, #tpu.memory_space<vmem>>, vector<1x512xf32>
    %133 = vector.broadcast %132 : vector<1x512xf32> to vector<4x512xf32>
    %134 = arith.mulf %131, %133 : vector<4x512xf32>
    %135 = arith.truncf %134 : vector<4x512xf32> to vector<4x512xbf16>
    %c28_60 = arith.constant 28 : index
    %c0_61 = arith.constant 0 : index
    %136 = vector.load %arg8[%c28_60, %c0_61] : memref<36x512xbf16, #tpu.memory_space<vmem>>, vector<4x512xbf16>
    tpu.vector_store %arg8[%c28_60, %c0_61], %135 {strides = array<i32>} : memref<36x512xbf16, #tpu.memory_space<vmem>>, vector<4x512xbf16>,
    %137 = vector.extract_strided_slice %78 {offsets = [0, 17], sizes = [4, 495], strides = [1, 1]} : vector<4x512xf32> to vector<4x495xf32>
    %138 = vector.extract_strided_slice %78 {offsets = [0, 0], sizes = [4, 17], strides = [1, 1]} : vector<4x512xf32> to vector<4x17xf32>
    %139 = tpu.concatenate %137, %138 in 1 : vector<4x495xf32>, vector<4x17xf32> -> vector<4x512xf32>
    %c8_62 = arith.constant 8 : index
    %c0_63 = arith.constant 0 : index
    %140 = vector.load %arg6[%c8_62, %c0_63] : memref<9x512xf32, #tpu.memory_space<vmem>>, vector<1x512xf32>
    %141 = vector.broadcast %140 : vector<1x512xf32> to vector<4x512xf32>
    %142 = arith.mulf %139, %141 : vector<4x512xf32>
    %143 = arith.truncf %142 : vector<4x512xf32> to vector<4x512xbf16>
    %c32_64 = arith.constant 32 : index
    %c0_65 = arith.constant 0 : index
    %144 = vector.load %arg8[%c32_64, %c0_65] : memref<36x512xbf16, #tpu.memory_space<vmem>>, vector<4x512xbf16>
    tpu.vector_store %arg8[%c32_64, %c0_65], %143 {strides = array<i32>} : memref<36x512xbf16, #tpu.memory_space<vmem>>, vector<4x512xbf16>,
    %c0_66 = arith.constant 0 : index
    %c0_67 = arith.constant 0 : index
    %145 = vector.load %arg4[%c0_66, %c0_67] : memref<4x36xbf16, #tpu.memory_space<vmem>>, vector<4x36xbf16>
    %c0_68 = arith.constant 0 : index
    %c0_69 = arith.constant 0 : index
    %146 = vector.load %arg8[%c0_68, %c0_69] : memref<36x512xbf16, #tpu.memory_space<vmem>>, vector<36x512xbf16>
    %cst_70 = arith.constant dense<0.000000e+00> : vector<4x512xf32>
    %147 = tpu.matmul %145, %146, %cst_70 {dimension_numbers = #tpu.dot_dimension_numbers<[1], [0], [0], [1], [0, 0, 1, 1], [], []>} : vector<4x36xbf16>, vector<36x512xbf16>, vector<4x512xf32> -> vector<4x512xf32>
    %c0_71 = arith.constant 0 : index
    %c0_72 = arith.constant 0 : index
    %148 = vector.load %arg5[%c0_71, %c0_72] : memref<4x1xf32, #tpu.memory_space<vmem>>, vector<4x1xf32>
    %149 = vector.broadcast %148 : vector<4x1xf32> to vector<4x512xf32>
    %150 = arith.addf %147, %149 : vector<4x512xf32>
    %151 = arith.addf %150, %4 : vector<4x512xf32>
    %cst_73 = arith.constant 0.000000e+00 : f32
    %152 = vector.broadcast %cst_73 : f32 to vector<4x512xf32>
    %153 = arith.maximumf %151, %152 : vector<4x512xf32>
    %154 = vector.extract_strided_slice %153 {offsets = [0, 0], sizes = [4, 256], strides = [1, 1]} : vector<4x512xf32> to vector<4x256xf32>
    %c0_74 = arith.constant 0 : index
    %c0_75 = arith.constant 0 : index
    %c0_76 = arith.constant 0 : index
    %155 = vector.load %arg7[%c0_74, %c0_75, %c0_76] : memref<2x4x256xf32, #tpu.memory_space<vmem>>, vector<1x4x256xf32>
    %156 = vector.shape_cast %155 : vector<1x4x256xf32> to vector<4x256xf32>
    %157 = vector.shape_cast %154 : vector<4x256xf32> to vector<1x4x256xf32>
    tpu.vector_store %arg7[%c0_74, %c0_75, %c0_76], %157 {strides = array<i32>} : memref<2x4x256xf32, #tpu.memory_space<vmem>>, vector<1x4x256xf32>,
    %158 = vector.extract_strided_slice %153 {offsets = [0, 256], sizes = [4, 256], strides = [1, 1]} : vector<4x512xf32> to vector<4x256xf32>
    %c1_77 = arith.constant 1 : index
    %c0_78 = arith.constant 0 : index
    %c0_79 = arith.constant 0 : index
    %159 = vector.load %arg7[%c1_77, %c0_78, %c0_79] : memref<2x4x256xf32, #tpu.memory_space<vmem>>, vector<1x4x256xf32>
    %160 = vector.shape_cast %159 : vector<1x4x256xf32> to vector<4x256xf32>
    %161 = vector.shape_cast %158 : vector<4x256xf32> to vector<1x4x256xf32>
    tpu.vector_store %arg7[%c1_77, %c0_78, %c0_79], %161 {strides = array<i32>} : memref<2x4x256xf32, #tpu.memory_space<vmem>>, vector<1x4x256xf32>,
    return
  }
  func.func @transform_0(%arg0: i32) -> (i32, i32, i32) {
    %c0_i32 = arith.constant 0 : i32
    %c0_i32_0 = arith.constant 0 : i32
    %c0_i32_1 = arith.constant 0 : i32
    return %arg0, %c0_i32, %c0_i32_0 : i32, i32, i32
  }
  func.func @transform_1(%arg0: i32) -> (i32, i32) {
    %c0_i32 = arith.constant 0 : i32
    %c0_i32_0 = arith.constant 0 : i32
    %c0_i32_1 = arith.constant 0 : i32
    return %c0_i32, %c0_i32_0 : i32, i32
  }
  func.func @transform_2(%arg0: i32) -> (i32, i32) {
    %c0_i32 = arith.constant 0 : i32
    %c0_i32_0 = arith.constant 0 : i32
    %c0_i32_1 = arith.constant 0 : i32
    return %c0_i32, %c0_i32_0 : i32, i32
  }
  func.func @transform_3(%arg0: i32) -> (i32, i32) {
    %c0_i32 = arith.constant 0 : i32
    %c0_i32_0 = arith.constant 0 : i32
    %c0_i32_1 = arith.constant 0 : i32
    return %c0_i32, %c0_i32_0 : i32, i32
  }
  func.func @transform_4(%arg0: i32) -> (i32, i32) {
    %c0_i32 = arith.constant 0 : i32
    %c0_i32_0 = arith.constant 0 : i32
    %c0_i32_1 = arith.constant 0 : i32
    return %c0_i32, %c0_i32_0 : i32, i32
  }
  func.func @transform_5(%arg0: i32) -> (i32, i32) {
    %c0_i32 = arith.constant 0 : i32
    %c0_i32_0 = arith.constant 0 : i32
    %c0_i32_1 = arith.constant 0 : i32
    return %c0_i32, %c0_i32_0 : i32, i32
  }
  func.func @transform_6(%arg0: i32) -> (i32, i32, i32) {
    %c0_i32 = arith.constant 0 : i32
    %c0_i32_0 = arith.constant 0 : i32
    %c0_i32_1 = arith.constant 0 : i32
    return %arg0, %c0_i32, %c0_i32_0 : i32, i32, i32
  }
}

</mosaic_0001>

<bundles_post_ra>
// kernel: basic_block_forward.1
= control target key start
LH: loop header
LB: loop body
LE: loop exit
PB: predicated region body
PF: predicated region fallthrough
CT: control target
= control target key end

     0   :  { %s1597_s25 = smov 111   ;;  %s1598_s26 = smov 127   ;;  %v1605_v6 = vmov 0   ;;  %v53_v8 = vlaneseq  ;;  %vm507_vm0 = vcmask 908288   ;;  %vm314_vm1 = vcmask 1039360   ;;  %s2022_s0 = inlined_call_operand.vmem [shape: f32[2,4,256], index: 0, kind: input, shape index: {}]   ;;  %s2023_s2 = inlined_call_operand.vmem [shape: f32[4,1], index: 2, kind: input, shape index: {}]   ;;  %s2024_s5 = inlined_call_operand.vmem [shape: f32[9,512], index: 5, kind: input, shape index: {}]   ;;  %s2025_s1 = inlined_call_operand.vmem [shape: bf16[4,36], index: 1, kind: input, shape index: {}]   ;;  %s2026_s4 = inlined_call_operand.vmem [shape: f32[4,1], index: 4, kind: input, shape index: {}]   ;;  %s2027_s3 = inlined_call_operand.vmem [shape: bf16[4,36], index: 3, kind: input, shape index: {}]   ;;  %s2028_s6 = inlined_call_operand.vmem [shape: f32[2,4,256], index: 6, kind: output, shape index: {}]  }
   0x1   :  { %v1437_v0 = vld [vmem:[%s2022_s0 + $0x8] sm:$0xff]  ;;  %v24_v1 = vld [vmem:[%s2022_s0] sm:$0xff]  ;;  %s1599_s27 = smov 112   ;;  %s1600_s28 = smov 113   ;;  %678 = vmatprep.mubr.bf16.mxu0 %v1605_v6  ;;  %719 = vmatprep.mubr.bf16.mxu1 %v1605_v6  ;;  %vm442_vm2 = vcmask 916480   ;;  %vm633_vm3 = vcmask 1041408  }
   0x2   :  { %503 = vrot.lane.b32.xlu1 %v1437_v0, %s1597_s25  ;;  %499 = vrot.lane.b32.xlu0 %v24_v1, %s1597_s25  ;;  %v1649_v2 = vcombine.high %v1437_v0, %v1437_v0  ;;  %v1651_v3 = vcombine.high %v24_v1, %v24_v1  ;;  %s1601_s29 = smov 16   ;;  %s1602_s30 = smov 1   ;;  %v573_v7 = vld [vmem:[%s2023_s2] sm:$0xf]  ;;  %v54_v9 = vshrl.u32 %v53_v8, 7  ;;  %vm379_vm4 = vcmask 924672  }
   0x3   :  { %s1603_s7 = smov 17   ;;  %s1604_s8 = smov 15   ;;  %1566 = vset.pattern.permute.xlu0 %v1605_v6  ;;  %v1460_v14 = vld [vmem:[%s2024_s5 + $0x20] ss:$8 sm:$0xf]  ;;  %vm104_vm5 = vcmask 130048  }
   0x4   :  { %v1530_v4 = vpack.c.bf16 %v1649_v2, %v1437_v0  ;;  %v1529_v5 = vpack.c.bf16 %v1651_v3, %v24_v1  ;;  %v1707_v10 = vsub.s32 2, %v54_v9  ;;  %v1709_v11 = vsub.s32 3, %v54_v9  ;;  %v1451_v31 = vld [vmem:[%s2024_s5 + $0x5] ss:$8 sm:$0xf] }
   0x5   :  { %v1711_v12 = vsub.s32 0, %v54_v9  ;;  %v1713_v13 = vsub.s32 1, %v54_v9  ;;  %v1457_v46 = vld [vmem:[%s2024_s5 + $0x7] ss:$8 sm:$0xf]  ;;  %vm232_vm6 = vcmask 7168  }
   0x6   :  { %505 = vrot.lane.b32.xlu1 %v1649_v2, %s1597_s25  ;;  %501 = vrot.lane.b32.xlu0 %v1651_v3, %s1597_s25  ;;  %305 = vst [vmem:[#allocation2 + $0x28] sm:$0x33] %v1530_v4  ;;  %304 = vst [vmem:[#allocation2 + $0x48] sm:$0x33] %v1529_v5  ;;  %v531_v17 = vrot.slane %v1460_v14, %v1707_v10  ;;  %v535_v18 = vrot.slane %v1460_v14, %v1709_v11  ;;  %vm42_vm7 = vcmask 138240   ;;  %vm169_vm8 = vcmask 121856  }
   0x7   :  { %v523_v19 = vrot.slane %v1460_v14, %v1711_v12  ;;  %v527_v20 = vrot.slane %v1460_v14, %v1713_v13  ;;  %v330_v36 = vrot.slane %v1451_v31, %v1711_v12  ;;  %v342_v37 = vrot.slane %v1451_v31, %v1709_v11 }
   0x8   :  { %v334_v38 = vrot.slane %v1451_v31, %v1713_v13  ;;  %v338_v39 = vrot.slane %v1451_v31, %v1707_v10  ;;  %v458_v54 = vrot.slane %v1457_v46, %v1711_v12  ;;  %v470_v58 = vrot.slane %v1457_v46, %v1709_v11 }
   0x9   :  { %v462_v60 = vrot.slane %v1457_v46, %v1713_v13  ;;  %vm629_vm9 = vcmask 293888  }
   0xa   :  { %308 = vrot.lane.b32.xlu1 %v1651_v3, %s1598_s26  ;;  %306 = vrot.lane.b32.xlu0 %v24_v1, %s1598_s26 }
   0xe   :  { %312 = vrot.lane.b32.xlu1 %v1649_v2, %s1598_s26  ;;  %310 = vrot.lane.b32.xlu0 %v1437_v0, %s1598_s26 }
  0x12   :  { %436 = vrot.lane.b32.xlu1 %v1651_v3, %s1599_s27  ;;  %434 = vrot.lane.b32.xlu0 %v24_v1, %s1599_s27 }
  0x16   :  { %440 = vrot.lane.b32.xlu1 %v1649_v2, %s1599_s27  ;;  %438 = vrot.lane.b32.xlu0 %v1437_v0, %s1599_s27 }
  0x1a   :  { %373 = vrot.lane.b32.xlu1 %v1651_v3, %s1600_s28  ;;  %371 = vrot.lane.b32.xlu0 %v24_v1, %s1600_s28 }
  0x1e   :  { %377 = vrot.lane.b32.xlu1 %v1649_v2, %s1600_s28  ;;  %375 = vrot.lane.b32.xlu0 %v1437_v0, %s1600_s28 }
  0x22   :  { %98 = vrot.lane.b32.xlu1 %v24_v1, %s1601_s29  ;;  %95 = vrot.lane.b32.xlu0 %v1649_v2, %s1601_s29 }
  0x26   :  { %102 = vrot.lane.b32.xlu1 %v1437_v0, %s1601_s29  ;;  %100 = vrot.lane.b32.xlu0 %v1651_v3, %s1601_s29 }
  0x2a   :  { %226 = vrot.lane.b32.xlu1 %v24_v1, %s1602_s30  ;;  %223 = vrot.lane.b32.xlu0 %v1649_v2, %s1602_s30 }
  0x2e   :  { %230 = vrot.lane.b32.xlu1 %v1437_v0, %s1602_s30  ;;  %228 = vrot.lane.b32.xlu0 %v1651_v3, %s1602_s30 }
  0x32   :  { %36 = vrot.lane.b32.xlu1 %v24_v1, %s1603_s7  ;;  %33 = vrot.lane.b32.xlu0 %v1649_v2, %s1603_s7 }
  0x36   :  { %40 = vrot.lane.b32.xlu1 %v1437_v0, %s1603_s7  ;;  %38 = vrot.lane.b32.xlu0 %v1651_v3, %s1603_s7 }
  0x3a   :  { %163 = vrot.lane.b32.xlu1 %v24_v1, %s1604_s8  ;;  %160 = vrot.lane.b32.xlu0 %v1649_v2, %s1604_s8 }
  0x3e   :  { %167 = vrot.lane.b32.xlu1 %v1437_v0, %s1604_s8  ;;  %165 = vrot.lane.b32.xlu0 %v1651_v3, %s1604_s8  ;;  %v466_v0 = vrot.slane %v1457_v46, %v1707_v10 }
  0x42   :  { %576 = vperm.xlu0 %1566, %v573_v7  }
  0x74   :  { %v504_v15 = vpop.permute.xlu1 %503  ;;  %v500_v16 = vpop.permute.xlu0 %499 }
  0x78   :  { %v506_v21 = vpop.permute.xlu1 %505  ;;  %v502_v22 = vpop.permute.xlu0 %501 }
  0x79   :  { %v510_v23 = vsel %vm507_vm0, %v504_v15, %v506_v21  ;;  %v516_v24 = vsel %vm507_vm0, %v506_v21, %v500_v16  ;;  %v508_v25 = vsel %vm507_vm0, %v500_v16, %v502_v22  ;;  %v509_v26 = vsel %vm507_vm0, %v502_v22, %v504_v15  ;;  %v1454_v22 = vld [vmem:[%s2024_s5 + $0x6] ss:$8 sm:$0xf] }
  0x7a   :  { %v542_v27 = vmul.f32 %v531_v17, %v510_v23  ;;  %v543_v28 = vmul.f32 %v535_v18, %v516_v24  ;;  %v540_v29 = vmul.f32 %v523_v19, %v508_v25  ;;  %v541_v30 = vmul.f32 %v527_v20, %v509_v26 }
  0x7b   :  { %v399_v31 = vrot.slane %v1454_v22, %v1713_v13 }
  0x7c   :  { %v1538_v32 = vpack.c.bf16 %v543_v28, %v542_v27  ;;  %v1537_v33 = vpack.c.bf16 %v541_v30, %v540_v29  ;;  %v309_v34 = vpop.permute.xlu1 %308  ;;  %v307_v35 = vpop.permute.xlu0 %306  ;;  %v395_v27 = vrot.slane %v1454_v22, %v1711_v12  ;;  %v407_v28 = vrot.slane %v1454_v22, %v1709_v11 }
  0x7d   :  { %v315_v40 = vsel %vm314_vm1, %v307_v35, %v309_v34 }
  0x7e   :  { %561 = vst [vmem:[#allocation2 + $0x38] sm:$0x33] %v1538_v32  ;;  %560 = vst [vmem:[#allocation2 + $0x40] sm:$0x33] %v1537_v33  ;;  %v347_v47 = vmul.f32 %v330_v36, %v315_v40  ;;  %v403_v32 = vrot.slane %v1454_v22, %v1707_v10 }
  0x80   :  { %v313_v41 = vpop.permute.xlu1 %312  ;;  %v311_v42 = vpop.permute.xlu0 %310 }
  0x81   :  { %v323_v43 = vsel %vm314_vm1, %v313_v41, %v307_v35  ;;  %v316_v44 = vsel %vm314_vm1, %v309_v34, %v311_v42  ;;  %v317_v45 = vsel %vm314_vm1, %v311_v42, %v313_v41 }
  0x82   :  { %v350_v48 = vmul.f32 %v342_v37, %v323_v43  ;;  %v348_v49 = vmul.f32 %v334_v38, %v316_v44  ;;  %v349_v50 = vmul.f32 %v338_v39, %v317_v45  ;;  %v1440_v43 = vld [vmem:[%s2024_s5 + $0x1] ss:$8 sm:$0xf] }
  0x84   :  { %v1531_v51 = vpack.c.bf16 %v348_v49, %v347_v47  ;;  %v1532_v52 = vpack.c.bf16 %v350_v48, %v349_v50  ;;  %v437_v53 = vpop.permute.xlu1 %436  ;;  %v435_v55 = vpop.permute.xlu0 %434  ;;  %v119_v48 = vrot.slane %v1440_v43, %v1711_v12  ;;  %v131_v49 = vrot.slane %v1440_v43, %v1709_v11 }
  0x85   :  { %v443_v56 = vsel %vm442_vm2, %v435_v55, %v437_v53  ;;  %v572_v57 = vld [vmem:[#allocation2 + $0x38] sm:$0x33]  ;;  %v571_v59 = vld [vmem:[#allocation2 + $0x40] sm:$0x33]  ;;  %v123_v50 = vrot.slane %v1440_v43, %v1713_v13 }
  0x86   :  { %v365_v61 = vrot.slane %v1531_v51, 6  ;;  %v366_v62 = vrot.slane %v1532_v52, 6  ;;  %v1474_v63 = vcombine.high %v572_v57, %v572_v57  ;;  %v1472_v1 = vcombine.high %v571_v59, %v571_v59 }
  0x87   :  { %v1471_v4 = vcombine.low %v571_v59, %v571_v59  ;;  %v1473_v5 = vcombine.low %v572_v57, %v572_v57  ;;  %v475_v7 = vmul.f32 %v458_v54, %v443_v56  ;;  %v127_v51 = vrot.slane %v1440_v43, %v1707_v10 }
  0x88   :  { %369 = vst [vmem:[#allocation2 + $0x48] sm:$0xcc] %v365_v61  ;;  %370 = vst [vmem:[#allocation2 + $0x28] sm:$0xcc] %v366_v62  ;;  %1477 = vmatprep.subr.msk.bf16.mxu1 %vm633_vm3, %v1474_v63  ;;  %v441_v8 = vpop.permute.xlu1 %440  ;;  %v439_v9 = vpop.permute.xlu0 %438  ;;  %1475 = vmatprep.subr.msk.bf16.mxu0 %vm633_vm3, %v1472_v1 }
  0x89   :  { %v451_v14 = vsel %vm442_vm2, %v441_v8, %v435_v55  ;;  %v444_v15 = vsel %vm442_vm2, %v437_v53, %v439_v9  ;;  %v445_v16 = vsel %vm442_vm2, %v439_v9, %v441_v8  ;;  %v635_v17 = vsel %vm633_vm3, %v1471_v4, 0  ;;  %v1446_v62 = vld [vmem:[%s2024_s5 + $0x3] ss:$8 sm:$0xf] }
  0x8a   :  { %v478_v18 = vmul.f32 %v470_v58, %v451_v14  ;;  %v476_v19 = vmul.f32 %v462_v60, %v444_v15  ;;  %v477_v20 = vmul.f32 %v466_v0, %v445_v16  ;;  %657 = vmatpush1.bf16.msra.mxu0 %v635_v17  ;;  %v641_v21 = vsel %vm633_vm3, %v1473_v5, 0 }
  0x8b   :  { %698 = vmatpush1.bf16.msra.mxu1 %v641_v21  ;;  %v259_v8 = vrot.slane %v1446_v62, %v1709_v11  ;;  %v251_v14 = vrot.slane %v1446_v62, %v1713_v13 }
  0x8c   :  { %v1535_v23 = vpack.c.bf16 %v476_v19, %v475_v7  ;;  %v1536_v24 = vpack.c.bf16 %v478_v18, %v477_v20  ;;  %v374_v25 = vpop.permute.xlu1 %373  ;;  %v372_v26 = vpop.permute.xlu0 %371  ;;  %v247_v7 = vrot.slane %v1446_v62, %v1711_v12  ;;  %v255_v18 = vrot.slane %v1446_v62, %v1707_v10 }
  0x8d   :  { %v380_v33 = vsel %vm379_vm4, %v372_v26, %v374_v25 }
  0x8e   :  { %v493_v29 = vrot.slane %v1535_v23, 6  ;;  %v494_v30 = vrot.slane %v1536_v24, 6  ;;  %v412_v39 = vmul.f32 %v395_v27, %v380_v33 }
  0x8f   :  { %v567_v5 = vld [vmem:[#allocation2 + $0x48] sm:$0xff] }
  0x90   :  { %497 = vst [vmem:[#allocation2 + $0x8] sm:$0xcc] %v493_v29  ;;  %498 = vst [vmem:[#allocation2 + $0x20] sm:$0xcc] %v494_v30  ;;  %v378_v34 = vpop.permute.xlu1 %377  ;;  %v376_v35 = vpop.permute.xlu0 %375 }
  0x91   :  { %v388_v36 = vsel %vm379_vm4, %v378_v34, %v372_v26  ;;  %v381_v37 = vsel %vm379_vm4, %v374_v25, %v376_v35  ;;  %v382_v38 = vsel %vm379_vm4, %v376_v35, %v378_v34 }
  0x92   :  { %v415_v40 = vmul.f32 %v407_v28, %v388_v36  ;;  %v413_v41 = vmul.f32 %v399_v31, %v381_v37  ;;  %v414_v42 = vmul.f32 %v403_v32, %v382_v38  ;;  %v51_v32 = vld [vmem:[%s2024_s5] ss:$8 sm:$0xf] }
  0x93   :  { %v56_v37 = vrot.slane %v51_v32, %v1711_v12  ;;  %v68_v38 = vrot.slane %v51_v32, %v1709_v11 }
  0x94   :  { %v1533_v44 = vpack.c.bf16 %v413_v41, %v412_v39  ;;  %v1534_v45 = vpack.c.bf16 %v415_v40, %v414_v42  ;;  %v99_v46 = vpop.permute.xlu1 %98  ;;  %v96_v47 = vpop.permute.xlu0 %95  ;;  %v60_v41 = vrot.slane %v51_v32, %v1713_v13  ;;  %v64_v42 = vrot.slane %v51_v32, %v1707_v10 }
  0x95   :  { %v112_v52 = vsel %vm104_vm5, %v96_v47, %v99_v46 }
  0x96   :  { %432 = vst [vmem:[#allocation2 + $0x8] sm:$0x33] %v1533_v44  ;;  %433 = vst [vmem:[#allocation2 + $0x20] sm:$0x33] %v1534_v45  ;;  %v136_v58 = vmul.f32 %v119_v48, %v112_v52 }
  0x98   :  { %v103_v53 = vpop.permute.xlu1 %102  ;;  %v101_v54 = vpop.permute.xlu0 %100 }
  0x99   :  { %v107_v55 = vsel %vm104_vm5, %v103_v53, %v96_v47  ;;  %v105_v56 = vsel %vm104_vm5, %v99_v46, %v101_v54  ;;  %v106_v57 = vsel %vm104_vm5, %v101_v54, %v103_v53  ;;  %v1443_v53 = vld [vmem:[%s2024_s5 + $0x2] ss:$8 sm:$0xf] }
  0x9a   :  { %v139_v59 = vmul.f32 %v131_v49, %v107_v55  ;;  %v137_v60 = vmul.f32 %v123_v50, %v105_v56  ;;  %v138_v61 = vmul.f32 %v127_v51, %v106_v57 }
  0x9c   :  { %v1523_v63 = vpack.c.bf16 %v137_v60, %v136_v58  ;;  %v1524_v0 = vpack.c.bf16 %v139_v59, %v138_v61  ;;  %v227_v1 = vpop.permute.xlu1 %226  ;;  %v224_v4 = vpop.permute.xlu0 %223  ;;  %v184_v58 = vrot.slane %v1443_v53, %v1711_v12  ;;  %v196_v59 = vrot.slane %v1443_v53, %v1709_v11 }
  0x9d   :  { %v1573_v9 = vld [vmem:[#allocation2 + $0x2c] ss:$-8 sps:$4 sm:$0xff]   ;;  %v1575_v20 = vld [vmem:[#allocation2 + $0x28] ss:$-8 sps:$4 sm:$0xff]   ;;  %v240_v21 = vsel %vm232_vm6, %v224_v4, %v227_v1  ;;  %v188_v60 = vrot.slane %v1443_v53, %v1713_v13  ;;  %v192_v61 = vrot.slane %v1443_v53, %v1707_v10 }
  0x9e   :  { %v569_v15 = vld [vmem:[#allocation2 + $0x8] sm:$0xff]  ;;  %v154_v16 = vrot.slane %v1523_v63, 6  ;;  %v155_v17 = vrot.slane %v1524_v0, 6  ;;  %699 = vmatprep.subr.bf16.mxu1 %v1573_v9  ;;  %v264_v28 = vmul.f32 %v247_v7, %v240_v21  ;;  %v562_v21 = vld [vmem:[%s2025_s1] sm:$0x3] }
  0x9f   :  { %v1468_v19 = vcombine.high %v567_v5, %v569_v15  ;;  %v1467_v22 = vcombine.low %v567_v5, %v569_v15  ;;  %700 = vmatpush1.bf16.msra.mxu1 %v1575_v20 }
  0xa0   :  { %158 = vst [vmem:[#allocation2 + $0x30] sm:$0xcc] %v154_v16  ;;  %159 = vst [vmem:[#allocation2] sm:$0xcc] %v155_v17  ;;  %v231_v23 = vpop.permute.xlu1 %230  ;;  %v229_v24 = vpop.permute.xlu0 %228 }
  0xa1   :  { %658 = vmatprep.subr.bf16.mxu0 %v1468_v19  ;;  %v235_v25 = vsel %vm232_vm6, %v231_v23, %v224_v4  ;;  %v233_v26 = vsel %vm232_vm6, %v227_v1, %v229_v24  ;;  %v234_v27 = vsel %vm232_vm6, %v229_v24, %v231_v23 }
  0xa2   :  { %659 = vmatpush1.bf16.msra.mxu0 %v1467_v22  ;;  %v267_v29 = vmul.f32 %v259_v8, %v235_v25  ;;  %v265_v30 = vmul.f32 %v251_v14, %v233_v26  ;;  %v266_v31 = vmul.f32 %v255_v18, %v234_v27 }
  0xa4   :  { %v1527_v33 = vpack.c.bf16 %v265_v30, %v264_v28  ;;  %v1528_v34 = vpack.c.bf16 %v267_v29, %v266_v31  ;;  %v37_v35 = vpop.permute.xlu1 %36  ;;  %v34_v36 = vpop.permute.xlu0 %33 }
  0xa5   :  { %v50_v43 = vsel %vm42_vm7, %v34_v36, %v37_v35 }
  0xa6   :  { %v282_v39 = vrot.slane %v1527_v33, 6  ;;  %v283_v40 = vrot.slane %v1528_v34, 6  ;;  %v73_v49 = vmul.f32 %v56_v37, %v50_v43 }
  0xa8   :  { %286 = vst [vmem:[#allocation2 + $0x18] sm:$0xcc] %v282_v39  ;;  %287 = vst [vmem:[#allocation2 + $0x10] sm:$0xcc] %v283_v40  ;;  %v41_v44 = vpop.permute.xlu1 %40  ;;  %v39_v45 = vpop.permute.xlu0 %38  ;;  %v1261_v40 = vld [vmem:[%s2026_s4] sm:$0xf] }
  0xa9   :  { %v45_v46 = vsel %vm42_vm7, %v41_v44, %v34_v36  ;;  %v43_v47 = vsel %vm42_vm7, %v37_v35, %v39_v45  ;;  %v44_v48 = vsel %vm42_vm7, %v39_v45, %v41_v44 }
  0xaa   :  { %v76_v50 = vmul.f32 %v68_v38, %v45_v46  ;;  %v74_v51 = vmul.f32 %v60_v41, %v43_v47  ;;  %v75_v52 = vmul.f32 %v64_v42, %v44_v48 }
  0xac   :  { %v1521_v54 = vpack.c.bf16 %v74_v51, %v73_v49  ;;  %v1522_v55 = vpack.c.bf16 %v76_v50, %v75_v52  ;;  %v164_v56 = vpop.permute.xlu1 %163  ;;  %v161_v57 = vpop.permute.xlu0 %160 }
  0xad   :  { %v177_v62 = vsel %vm169_vm8, %v161_v57, %v164_v56 }
  0xae   :  { %93 = vst [vmem:[#allocation2 + $0x30] sm:$0x33] %v1521_v54  ;;  %94 = vst [vmem:[#allocation2] sm:$0x33] %v1522_v55  ;;  %v201_v7 = vmul.f32 %v184_v58, %v177_v62 }
  0xaf   :  { %v1501_v55 = vld [vmem:[%s2024_s5 + $0x20] ss:$8 sm:$0xf] }
  0xb0   :  { %v168_v63 = vpop.permute.xlu1 %167  ;;  %v166_v0 = vpop.permute.xlu0 %165 }
  0xb1   :  { %v172_v1 = vsel %vm169_vm8, %v168_v63, %v161_v57  ;;  %v170_v4 = vsel %vm169_vm8, %v164_v56, %v166_v0  ;;  %v171_v5 = vsel %vm169_vm8, %v166_v0, %v168_v63  ;;  %v1481_v56 = vld [vmem:[%s2024_s5 + $0x1] ss:$8 sm:$0xf] }
  0xb2   :  { %v204_v8 = vmul.f32 %v196_v59, %v172_v1  ;;  %v202_v9 = vmul.f32 %v188_v60, %v170_v4  ;;  %v203_v14 = vmul.f32 %v192_v61, %v171_v5  ;;  %v1211_v59 = vrot.slane %v1501_v55, %v1711_v12 }
  0xb3   :  { %v1215_v60 = vrot.slane %v1501_v55, %v1713_v13  ;;  %v819_v61 = vrot.slane %v1481_v56, %v1711_v12  ;;  %v831_v62 = vrot.slane %v1481_v56, %v1709_v11  ;;  %v823_v63 = vrot.slane %v1481_v56, %v1713_v13 }
  0xb4   :  { %v1525_v15 = vpack.c.bf16 %v202_v9, %v201_v7  ;;  %v1526_v16 = vpack.c.bf16 %v204_v8, %v203_v14  ;;  %v827_v0 = vrot.slane %v1481_v56, %v1707_v10  ;;  %v1487_v14 = vld [vmem:[%s2024_s5 + $0x3] ss:$8 sm:$0xf] }
  0xb6   :  { %221 = vst [vmem:[#allocation2 + $0x18] sm:$0x33] %v1525_v15  ;;  %222 = vst [vmem:[#allocation2 + $0x10] sm:$0x33] %v1526_v16  ;;  %v1219_v15 = vrot.slane %v1501_v55, %v1707_v10  ;;  %v1223_v16 = vrot.slane %v1501_v55, %v1709_v11 }
  0xbd   :  { %v1576_v17 = vld [vmem:[#allocation2 + $0x34] ss:$-24 sps:$4 sm:$0xff]   ;;  %v1580_v19 = vld [vmem:[#allocation2 + $0x30] ss:$-24 sps:$4 sm:$0xff]   ;;  %v577_v22 = vpop.permute.xlu0 %576 }
  0xbe   :  { %v1578_v18 = vld [vmem:[#allocation2 + $0x4] ss:$16 sps:$4 sm:$0xff]   ;;  %v1581_v20 = vld [vmem:[#allocation2] ss:$16 sps:$4 sm:$0xff]   ;;  %660 = vmatprep.subr.bf16.mxu0 %v1576_v17 }
  0xbf   :  { %701 = vmatprep.subr.bf16.mxu1 %v1578_v18  ;;  %661 = vmatpush1.bf16.msra.mxu0 %v1580_v19 }
  0xc0   :  { %702 = vmatpush1.bf16.msra.mxu1 %v1581_v20 }
  0xc2   :  { %1476 = vmatmul.mubr.msk.bf16.vlgmr.msra.gmra.mxu0 %vm629_vm9, %v562_v21 }
  0xc3   :  { %1478 = vmatmul.mubr.msk.bf16.vlgmr.msra.gmra.mxu1 %vm629_vm9, %v562_v21  ;;  %1364 = vmatprep.mubr.bf16.mxu0 %v1605_v6 }
  0xc4   :  { %1405 = vmatprep.mubr.bf16.mxu1 %v1605_v6 }
 0x182   :  { %v680_v23 = vpop.f32.mrf.mxu0 }
 0x183   :  { %v721_v24 = vpop.f32.mrf.mxu1  ;;  %v681_v25 = vadd.f32 %v680_v23, %v577_v22 }
 0x184   :  { %v722_v26 = vadd.f32 %v721_v24, %v577_v22  ;;  %v682_v27 = vpop.f32.mrf.mxu0 }
 0x185   :  { %v728_v28 = vmax.f32 %v681_v25, 0.0  ;;  %v683_v29 = vadd.f32 %v682_v27, %v577_v22  ;;  %v723_v30 = vpop.f32.mrf.mxu1  ;;  %v1897_v25 = vld [vmem:[%s2024_s5 + $0x5] ss:$8 sm:$0xf]  ;;  %v943_v27 = vrot.slane %v1487_v14, %v1711_v12 }
 0x186   :  { %v730_v31 = vmax.f32 %v722_v26, 0.0  ;;  %v724_v32 = vadd.f32 %v723_v30, %v577_v22  ;;  %v684_v33 = vpop.f32.mrf.mxu0  ;;  %v947_v30 = vrot.slane %v1487_v14, %v1713_v13 }
 0x187   :  { %v729_v34 = vmax.f32 %v683_v29, 0.0  ;;  %1189 = vrot.lane.b32.xlu1 %v728_v28, %s1597_s25  ;;  %v725_v35 = vpop.f32.mrf.mxu1 }
 0x188   :  { %v731_v36 = vmax.f32 %v724_v32, 0.0  ;;  %1193 = vrot.lane.b32.xlu0 %v730_v31, %s1597_s25  ;;  %v685_v6 = vpop.f32.mrf.mxu0 }
 0x189   :  { %v726_v37 = vpop.f32.mrf.mxu1  ;;  %v1547_v38 = vpack.c.bf16 %v729_v34, %v728_v28 }
 0x18a   :  { %v1548_v39 = vpack.c.bf16 %v731_v36, %v730_v31 }
 0x18b   :  { %800 = vrot.lane.b32.xlu1 %v728_v28, %s1601_s29  ;;  %1000 = vst [vmem:[#allocation2 + $0x48] sm:$0x33] %v1547_v38  ;;  %v1024_v38 = vrot.slane %v1897_v25, %v1711_v12 }
 0x18c   :  { %1002 = vrot.lane.b32.xlu0 %v728_v28, %s1598_s26  ;;  %1001 = vst [vmem:[#allocation2 + $0x28] sm:$0x33] %v1548_v39  ;;  %v1028_v39 = vrot.slane %v1897_v25, %v1713_v13 }
 0x18f   :  { %804 = vrot.lane.b32.xlu1 %v730_v31, %s1601_s29 }
 0x190   :  { %1006 = vrot.lane.b32.xlu0 %v730_v31, %s1598_s26 }
 0x193   :  { %924 = vrot.lane.b32.xlu1 %v728_v28, %s1602_s30 }
 0x194   :  { %1126 = vrot.lane.b32.xlu0 %v728_v28, %s1599_s27 }
 0x197   :  { %928 = vrot.lane.b32.xlu1 %v730_v31, %s1602_s30 }
 0x198   :  { %1130 = vrot.lane.b32.xlu0 %v730_v31, %s1599_s27 }
 0x19b   :  { %739 = vrot.lane.b32.xlu1 %v728_v28, %s1603_s7 }
 0x19c   :  { %1065 = vrot.lane.b32.xlu0 %v728_v28, %s1600_s28 }
 0x19f   :  { %743 = vrot.lane.b32.xlu1 %v730_v31, %s1603_s7 }
 0x1a0   :  { %1069 = vrot.lane.b32.xlu0 %v730_v31, %s1600_s28 }
 0x1a3   :  { %863 = vrot.lane.b32.xlu1 %v728_v28, %s1604_s8  ;;  %v955_v28 = vrot.slane %v1487_v14, %v1709_v11 }
 0x1a4   :  { %797 = vrot.lane.b32.xlu0 %v731_v36, %s1601_s29 }
 0x1a7   :  { %1191 = vrot.lane.b32.xlu1 %v729_v34, %s1597_s25 }
 0x1a8   :  { %802 = vrot.lane.b32.xlu0 %v729_v34, %s1601_s29 }
 0x1ab   :  { %1195 = vrot.lane.b32.xlu1 %v731_v36, %s1597_s25 }
 0x1ac   :  { %921 = vrot.lane.b32.xlu0 %v731_v36, %s1602_s30 }
 0x1af   :  { %1004 = vrot.lane.b32.xlu1 %v729_v34, %s1598_s26 }
 0x1b0   :  { %926 = vrot.lane.b32.xlu0 %v729_v34, %s1602_s30 }
 0x1b3   :  { %1008 = vrot.lane.b32.xlu1 %v731_v36, %s1598_s26 }
 0x1b4   :  { %733 = vrot.lane.b32.xlu0 %v731_v36, %s1603_s7 }
 0x1b7   :  { %1128 = vrot.lane.b32.xlu1 %v729_v34, %s1599_s27 }
 0x1b8   :  { %741 = vrot.lane.b32.xlu0 %v729_v34, %s1603_s7 }
 0x1bb   :  { %1132 = vrot.lane.b32.xlu1 %v731_v36, %s1599_s27 }
 0x1bc   :  { %860 = vrot.lane.b32.xlu0 %v731_v36, %s1604_s8 }
 0x1bf   :  { %1067 = vrot.lane.b32.xlu1 %v729_v34, %s1600_s28 }
 0x1c0   :  { %865 = vrot.lane.b32.xlu0 %v729_v34, %s1604_s8 }
 0x1c3   :  { %1071 = vrot.lane.b32.xlu1 %v731_v36, %s1600_s28 }
 0x1c4   :  { %1264 = vperm.xlu0 %1566, %v1261_v40  }
 0x1c7   :  { %867 = vrot.lane.b32.xlu1 %v730_v31, %s1604_s8  ;;  %v1905_v31 = vld [vmem:[%s2024_s5] ss:$8 sm:$0xf] }
 0x1c8   :  { %v758_v55 = vrot.slane %v1905_v31, %v1711_v12 }
 0x1f9   :  { %v1190_v41 = vpop.permute.xlu1 %1189 }
 0x1fa   :  { %v1194_v42 = vpop.permute.xlu0 %1193 }
 0x1fd   :  { %v801_v43 = vpop.permute.xlu1 %800 }
 0x1fe   :  { %v1849_v44 = vpop.permute.xlu0 %1002 }
 0x201   :  { %v805_v45 = vpop.permute.xlu1 %804 }
 0x202   :  { %v1851_v46 = vpop.permute.xlu0 %1006 }
 0x205   :  { %v1853_v47 = vpop.permute.xlu1 %924 }
 0x206   :  { %v1855_v48 = vpop.permute.xlu0 %1126 }
 0x209   :  { %v1857_v49 = vpop.permute.xlu1 %928 }
 0x20a   :  { %v1859_v50 = vpop.permute.xlu0 %1130 }
 0x20d   :  { %v1861_v51 = vpop.permute.xlu1 %739 }
 0x20e   :  { %v1863_v52 = vpop.permute.xlu0 %1065 }
 0x211   :  { %v1865_v53 = vpop.permute.xlu1 %743 }
 0x212   :  { %v1867_v54 = vpop.permute.xlu0 %1069 }
 0x215   :  { %v1875_v57 = vpop.permute.xlu1 %863 }
 0x216   :  { %v798_v58 = vpop.permute.xlu0 %797 }
 0x217   :  { %v808_v1 = vsel %vm104_vm5, %v805_v45, %v798_v58  ;;  %v813_v4 = vsel %vm104_vm5, %v798_v58, %v801_v43 }
 0x218   :  { %v836_v21 = vmul.f32 %v819_v61, %v813_v4  ;;  %v839_v22 = vmul.f32 %v831_v62, %v808_v1  ;;  %v1933_v1 = vld [vmem:[%s2024_s5 + $0x7] ss:$8 sm:$0xf] }
 0x219   :  { %v1192_v5 = vpop.permute.xlu1 %1191 }
 0x21a   :  { %v803_v7 = vpop.permute.xlu0 %802  ;;  %v1197_v8 = vsel %vm507_vm0, %v1190_v41, %v1192_v5  ;;  %v1198_v9 = vsel %vm507_vm0, %v1192_v5, %v1194_v42 }
 0x21b   :  { %v806_v17 = vsel %vm104_vm5, %v801_v43, %v803_v7  ;;  %v807_v18 = vsel %vm104_vm5, %v803_v7, %v805_v45  ;;  %v1228_v19 = vmul.f32 %v1211_v59, %v1197_v8  ;;  %v1229_v20 = vmul.f32 %v1215_v60, %v1198_v9 }
 0x21c   :  { %v837_v23 = vmul.f32 %v823_v63, %v806_v17  ;;  %v838_v24 = vmul.f32 %v827_v0, %v807_v18  ;;  %v951_v45 = vrot.slane %v1487_v14, %v1707_v10  ;;  %v770_v59 = vrot.slane %v1905_v31, %v1709_v11 }
 0x21d   :  { %v1555_v26 = vpack.c.bf16 %v1229_v20, %v1228_v19  ;;  %v1196_v29 = vpop.permute.xlu1 %1195  ;;  %v1032_v63 = vrot.slane %v1897_v25, %v1707_v10  ;;  %v1036_v0 = vrot.slane %v1897_v25, %v1709_v11  ;;  %v762_v19 = vrot.slane %v1905_v31, %v1713_v13 }
 0x21e   :  { %v1541_v32 = vpack.c.bf16 %v837_v23, %v836_v21  ;;  %v1542_v33 = vpack.c.bf16 %v839_v22, %v838_v24  ;;  %v922_v34 = vpop.permute.xlu0 %921  ;;  %v1199_v35 = vsel %vm507_vm0, %v1194_v42, %v1196_v29  ;;  %v1205_v36 = vsel %vm507_vm0, %v1196_v29, %v1190_v41 }
 0x21f   :  { %1248 = vst [vmem:[#allocation2 + $0x40] sm:$0x33] %v1555_v26  ;;  %v1230_v6 = vmul.f32 %v1219_v15, %v1199_v35  ;;  %v1231_v37 = vmul.f32 %v1223_v16, %v1205_v36  ;;  %v932_v42 = vsel %vm232_vm6, %v1857_v49, %v922_v34  ;;  %v937_v41 = vsel %vm232_vm6, %v922_v34, %v1853_v47 }
 0x220   :  { %v854_v40 = vrot.slane %v1541_v32, 6  ;;  %v855_v43 = vrot.slane %v1542_v33, 6  ;;  %v960_v9 = vmul.f32 %v943_v27, %v937_v41  ;;  %v963_v14 = vmul.f32 %v955_v28, %v932_v42 }
 0x221   :  { %v1556_v56 = vpack.c.bf16 %v1231_v37, %v1230_v6  ;;  %v1005_v58 = vpop.permute.xlu1 %1004  ;;  %v766_v20 = vrot.slane %v1905_v31, %v1707_v10  ;;  %v1152_v32 = vrot.slane %v1933_v1, %v1713_v13  ;;  %v1160_v36 = vrot.slane %v1933_v1, %v1709_v11 }
 0x222   :  { %858 = vst [vmem:[#allocation2 + $0x30] sm:$0xcc] %v854_v40  ;;  %859 = vst [vmem:[#allocation2] sm:$0xcc] %v855_v43  ;;  %v927_v60 = vpop.permute.xlu0 %926  ;;  %v1010_v61 = vsel %vm314_vm1, %v1849_v44, %v1005_v58  ;;  %v1011_v62 = vsel %vm314_vm1, %v1005_v58, %v1851_v46 }
 0x223   :  { %1249 = vst [vmem:[#allocation2 + $0x38] sm:$0x33] %v1556_v56  ;;  %v930_v4 = vsel %vm232_vm6, %v1853_v47, %v927_v60  ;;  %v931_v5 = vsel %vm232_vm6, %v927_v60, %v1857_v49  ;;  %v1041_v7 = vmul.f32 %v1024_v38, %v1010_v61  ;;  %v1042_v8 = vmul.f32 %v1028_v39, %v1011_v62 }
 0x224   :  { %v961_v15 = vmul.f32 %v947_v30, %v930_v4  ;;  %v962_v16 = vmul.f32 %v951_v45, %v931_v5  ;;  %v1148_v47 = vrot.slane %v1933_v1, %v1711_v12  ;;  %v1495_v45 = vld [vmem:[%s2024_s5 + $0x6] ss:$8 sm:$0xf] }
 0x225   :  { %v1549_v17 = vpack.c.bf16 %v1042_v8, %v1041_v7  ;;  %v1009_v18 = vpop.permute.xlu1 %1008  ;;  %v1087_v4 = vrot.slane %v1495_v45, %v1711_v12 }
 0x226   :  { %v1545_v21 = vpack.c.bf16 %v961_v15, %v960_v9  ;;  %v1546_v22 = vpack.c.bf16 %v963_v14, %v962_v16  ;;  %v734_v49 = vpop.permute.xlu0 %733  ;;  %v1012_v23 = vsel %vm314_vm1, %v1851_v46, %v1009_v18  ;;  %v1018_v24 = vsel %vm314_vm1, %v1009_v18, %v1849_v44  ;;  %v1259_v25 = vld [vmem:[#allocation2 + $0x40] sm:$0x33] }
 0x227   :  { %v1059_v26 = vrot.slane %v1549_v17, 6  ;;  %v747_v27 = vsel %vm42_vm7, %v1865_v53, %v734_v49  ;;  %v752_v28 = vsel %vm42_vm7, %v734_v49, %v1861_v51  ;;  %v1043_v29 = vmul.f32 %v1032_v63, %v1012_v23  ;;  %v1484_v63 = vld [vmem:[%s2024_s5 + $0x2] ss:$8 sm:$0xf] }
 0x228   :  { %v978_v30 = vrot.slane %v1545_v21, 6  ;;  %v979_v31 = vrot.slane %v1546_v22, 6  ;;  %v1156_v46 = vrot.slane %v1933_v1, %v1707_v10  ;;  %v1044_v33 = vmul.f32 %v1036_v0, %v1018_v24 }
 0x229   :  { %1063 = vst [vmem:[#allocation2 + $0x48] sm:$0xcc] %v1059_v26  ;;  %v1513_v44 = vcombine.high %v1259_v25, %v1259_v25  ;;  %v1129_v34 = vpop.permute.xlu1 %1128  ;;  %v1512_v35 = vcombine.low %v1259_v25, %v1259_v25  ;;  %v775_v6 = vmul.f32 %v758_v55, %v752_v28  ;;  %v778_v37 = vmul.f32 %v770_v59, %v747_v27 }
 0x22a   :  { %982 = vst [vmem:[#allocation2 + $0x18] sm:$0xcc] %v978_v30  ;;  %983 = vst [vmem:[#allocation2 + $0x10] sm:$0xcc] %v979_v31  ;;  %v742_v38 = vpop.permute.xlu0 %741  ;;  %v1134_v39 = vsel %vm442_vm2, %v1855_v48, %v1129_v34  ;;  %v1135_v40 = vsel %vm442_vm2, %v1129_v34, %v1859_v50  ;;  %v1260_v43 = vld [vmem:[#allocation2 + $0x38] sm:$0x33]  ;;  %v1550_v42 = vpack.c.bf16 %v1044_v33, %v1043_v29 }
 0x22b   :  { %v745_v41 = vsel %vm42_vm7, %v1861_v51, %v742_v38  ;;  %v746_v55 = vsel %vm42_vm7, %v742_v38, %v1865_v53  ;;  %1516 = vmatprep.subr.msk.bf16.mxu0 %vm633_vm3, %v1513_v44  ;;  %v1165_v56 = vmul.f32 %v1148_v47, %v1134_v39  ;;  %v1166_v60 = vmul.f32 %v1152_v32, %v1135_v40 }
 0x22c   :  { %v776_v58 = vmul.f32 %v762_v19, %v745_v41  ;;  %v777_v59 = vmul.f32 %v766_v20, %v746_v55  ;;  %v1321_v61 = vsel %vm633_vm3, %v1512_v35, 0  ;;  %v1060_v62 = vrot.slane %v1550_v42, 6 }
 0x22d   :  { %1343 = vmatpush1.bf16.msra.mxu0 %v1321_v61  ;;  %v1515_v0 = vcombine.high %v1260_v43, %v1260_v43  ;;  %v1133_v1 = vpop.permute.xlu1 %1132  ;;  %v1514_v51 = vcombine.low %v1260_v43, %v1260_v43  ;;  %v1553_v7 = vpack.c.bf16 %v1166_v60, %v1165_v56  ;;  %v1091_v17 = vrot.slane %v1495_v45, %v1713_v13  ;;  %v1250_v56 = vld [vmem:[%s2027_s3] sm:$0x3] }
 0x22e   :  { %v1539_v53 = vpack.c.bf16 %v776_v58, %v775_v6  ;;  %v1540_v5 = vpack.c.bf16 %v778_v37, %v777_v59  ;;  %v861_v8 = vpop.permute.xlu0 %860  ;;  %v1136_v9 = vsel %vm442_vm2, %v1859_v50, %v1133_v1  ;;  %1064 = vst [vmem:[#allocation2 + $0x28] sm:$0xcc] %v1060_v62  ;;  %v1142_v14 = vsel %vm442_vm2, %v1133_v1, %v1855_v48 }
 0x22f   :  { %1518 = vmatprep.subr.msk.bf16.mxu1 %vm633_vm3, %v1515_v0  ;;  %v1167_v15 = vmul.f32 %v1156_v46, %v1136_v9  ;;  %v1327_v16 = vsel %vm633_vm3, %v1514_v51, 0  ;;  %v1183_v18 = vrot.slane %v1553_v7, 6  ;;  %v882_v19 = vrot.slane %v1484_v63, %v1711_v12  ;;  %v1595_v0 = vld [vmem:[%s2022_s0] sm:$0xff]  ;;  %v1596_v9 = vld [vmem:[%s2022_s0 + $0x8] sm:$0xff] }
 0x230   :  { %795 = vst [vmem:[#allocation2 + $0x30] sm:$0x33] %v1539_v53  ;;  %796 = vst [vmem:[#allocation2] sm:$0x33] %v1540_v5  ;;  %v1168_v20 = vmul.f32 %v1160_v36, %v1142_v14  ;;  %1384 = vmatpush1.bf16.msra.mxu1 %v1327_v16  ;;  %v886_v50 = vrot.slane %v1484_v63, %v1713_v13  ;;  %v876_v47 = vsel %vm169_vm8, %v861_v8, %v1875_v57  ;;  %v1255_v43 = vld [vmem:[#allocation2 + $0x48] sm:$0xff] }
 0x231   :  { %v1068_v21 = vpop.permute.xlu1 %1067  ;;  %1187 = vst [vmem:[#allocation2 + $0x8] sm:$0xcc] %v1183_v18  ;;  %v1095_v24 = vrot.slane %v1495_v45, %v1707_v10  ;;  %v1099_v26 = vrot.slane %v1495_v45, %v1709_v11  ;;  %v899_v27 = vmul.f32 %v882_v19, %v876_v47  ;;  %v890_v34 = vrot.slane %v1484_v63, %v1707_v10 }
 0x232   :  { %v1554_v48 = vpack.c.bf16 %v1168_v20, %v1167_v15  ;;  %v866_v22 = vpop.permute.xlu0 %865  ;;  %v1073_v49 = vsel %vm379_vm4, %v1863_v52, %v1068_v21  ;;  %v1074_v23 = vsel %vm379_vm4, %v1068_v21, %v1867_v54  ;;  %v894_v35 = vrot.slane %v1484_v63, %v1709_v11 }
 0x233   :  { %v869_v12 = vsel %vm169_vm8, %v1875_v57, %v866_v22  ;;  %v1104_v25 = vmul.f32 %v1087_v4, %v1073_v49  ;;  %v1105_v13 = vmul.f32 %v1091_v17, %v1074_v23 }
 0x234   :  { %v1184_v28 = vrot.slane %v1554_v48, 6  ;;  %v900_v29 = vmul.f32 %v886_v50, %v869_v12 }
 0x235   :  { %v1551_v30 = vpack.c.bf16 %v1105_v13, %v1104_v25  ;;  %v1072_v31 = vpop.permute.xlu1 %1071 }
 0x236   :  { %1188 = vst [vmem:[#allocation2 + $0x20] sm:$0xcc] %v1184_v28  ;;  %v1543_v32 = vpack.c.bf16 %v900_v29, %v899_v27  ;;  %v1075_v46 = vsel %vm379_vm4, %v1867_v54, %v1072_v31  ;;  %v1081_v33 = vsel %vm379_vm4, %v1072_v31, %v1863_v52 }
 0x237   :  { %1124 = vst [vmem:[#allocation2 + $0x8] sm:$0x33] %v1551_v30  ;;  %v1106_v44 = vmul.f32 %v1095_v24, %v1075_v46  ;;  %v1107_v57 = vmul.f32 %v1099_v26, %v1081_v33 }
 0x238   :  { %919 = vst [vmem:[#allocation2 + $0x18] sm:$0x33] %v1543_v32 }
 0x239   :  { %v1552_v36 = vpack.c.bf16 %v1107_v57, %v1106_v44  ;;  %v868_v6 = vpop.permute.xlu1 %867 }
 0x23a   :  { %v870_v37 = vsel %vm169_vm8, %v866_v22, %v868_v6  ;;  %v871_v38 = vsel %vm169_vm8, %v868_v6, %v861_v8 }
 0x23b   :  { %1125 = vst [vmem:[#allocation2 + $0x20] sm:$0x33] %v1552_v36  ;;  %v901_v39 = vmul.f32 %v890_v34, %v870_v37  ;;  %v902_v54 = vmul.f32 %v894_v35, %v871_v38 }
 0x23d   :  { %v1544_v40 = vpack.c.bf16 %v902_v54, %v901_v39 }
 0x23e   :  { %v1257_v52 = vld [vmem:[#allocation2 + $0x8] sm:$0xff] }
 0x23f   :  { %920 = vst [vmem:[#allocation2 + $0x10] sm:$0x33] %v1544_v40  ;;  %v1508_v45 = vcombine.low %v1255_v43, %v1257_v52  ;;  %v1509_v42 = vcombine.high %v1255_v43, %v1257_v52  ;;  %v1588_v10 = vld [vmem:[#allocation2 + $0x34] ss:$-24 sps:$4 sm:$0xff]   ;;  %v1586_v55 = vld [vmem:[#allocation2 + $0x30] ss:$-24 sps:$4 sm:$0xff]   ;;  %v1265_v60 = vpop.permute.xlu0 %1264 }
 0x241   :  { %1344 = vmatprep.subr.bf16.mxu0 %v1509_v42 }
 0x242   :  { %1345 = vmatpush1.bf16.msra.mxu0 %v1508_v45  ;;  %v1589_v11 = vld [vmem:[#allocation2 + $0x28] ss:$-8 sps:$4 sm:$0xff]   ;;  %v1591_v41 = vld [vmem:[#allocation2 + $0x2c] ss:$-8 sps:$4 sm:$0xff]  }
 0x243   :  { %1346 = vmatprep.subr.bf16.mxu0 %v1588_v10  ;;  %1385 = vmatprep.subr.bf16.mxu1 %v1591_v41 }
 0x244   :  { %1386 = vmatpush1.bf16.msra.mxu1 %v1589_v11 }
 0x246   :  { %1347 = vmatpush1.bf16.msra.mxu0 %v1586_v55  ;;  %v1592_v58 = vld [vmem:[#allocation2] ss:$16 sps:$4 sm:$0xff]   ;;  %v1594_v59 = vld [vmem:[#allocation2 + $0x4] ss:$16 sps:$4 sm:$0xff]  }
 0x247   :  { %1387 = vmatprep.subr.bf16.mxu1 %v1594_v59 }
 0x248   :  { %1388 = vmatpush1.bf16.msra.mxu1 %v1592_v58 }
 0x249   :  { %1517 = vmatmul.mubr.msk.bf16.vlgmr.msra.gmra.mxu0 %vm629_vm9, %v1250_v56 }
 0x24b   :  { %1519 = vmatmul.mubr.msk.bf16.vlgmr.msra.gmra.mxu1 %vm629_vm9, %v1250_v56 }
 0x309   :  { %v1366_v61 = vpop.f32.mrf.mxu0 }
 0x30a   :  { %v1367_v62 = vadd.f32 %v1366_v61, %v1265_v60 }
 0x30b   :  { %v1368_v63 = vpop.f32.mrf.mxu0  ;;  %v1407_v4 = vpop.f32.mrf.mxu1 }
 0x30c   :  { %v1414_v1 = vadd.f32 %v1595_v0, %v1367_v62  ;;  %v1369_v51 = vadd.f32 %v1368_v63, %v1265_v60  ;;  %v1408_v5 = vadd.f32 %v1407_v4, %v1265_v60 }
 0x30d   :  { %v1370_v53 = vpop.f32.mrf.mxu0  ;;  %v1409_v8 = vpop.f32.mrf.mxu1 }
 0x30e   :  { %v1415_v7 = vadd.f32 %v1369_v51, %v1651_v3  ;;  %v1416_v14 = vadd.f32 %v1596_v9, %v1408_v5  ;;  %v1410_v16 = vadd.f32 %v1409_v8, %v1265_v60  ;;  %v1418_v17 = vmax.f32 %v1414_v1, 0.0 }
 0x30f   :  { %v1371_v15 = vpop.f32.mrf.mxu0  ;;  %v1411_v19 = vpop.f32.mrf.mxu1 }
 0x310   :  { %v1419_v18 = vmax.f32 %v1415_v7, 0.0  ;;  %v1417_v20 = vadd.f32 %v1410_v16, %v1649_v2  ;;  %v1420_v21 = vmax.f32 %v1416_v14, 0.0 }
 0x311   :  { %v1412_v47 = vpop.f32.mrf.mxu1 }
 0x312   :  { %v1424_v50 = vcombine.low %v1418_v17, %v1419_v18  ;;  %v1421_v48 = vmax.f32 %v1417_v20, 0.0 }
 0x314   :  { %1426 = vst [vmem:[%s2028_s6] sm:$0xff] %v1424_v50  ;;  %v1429_v3 = vcombine.low %v1420_v21, %v1421_v48 }
 0x316   :  { %1520 = vst [vmem:[%s2028_s6 + $0x8] sm:$0xff] %v1429_v3 }

</bundles_post_ra>
